<compile_context>
chip_gen: v6e
topology: v6e:2x2x1
jax: 0.10.0
libtpu: 0.0.40
codegen_flags: <defaults>
</compile_context>

<pallas_src>
import functools

import jax
import jax.numpy as jnp
from jax.experimental import pallas as pl
from jax.experimental.pallas import tpu as pltpu

# ---- sizes (small synthetic shapes consistent with the module) ----
B = 2          # batch
C_IMG = 3      # RGB image channels
H = W = 16     # image_size
HW = H * W     # 256 -> lane-dense last dim (2 full vregs wide)
SMPL_DIM = 85  # cam(3) + pose(72) + shape(10)
NV = 32        # synthetic number of SMPL vertices
CC = 4         # cond channels; cond[:, -1] is the background mask
C_OUT = C_IMG + CC      # 7 channels of input_G_src
C_SLAB = C_OUT + 1      # 8 -> full sublane tile; channel 7 = crop mask


# ---------------------------------------------------------------------------
# Fused kernel: (folded HMR+renderer surrogate) -> bg -> erode -> mask+store.
# ---------------------------------------------------------------------------
def _fused_kernel(smpl_ref, img_ref, w_pix_ref, erode_ref, slab_ref, *,
                  use_mask):
    # ---- 1+2. HMR + renderer surrogate, collapsed into one MXU push --------
    # TODO(synk): real SMPL linear-blend skinning (get_details) and the
    # neural-renderer rasterization (render_fim_wim / encode_fim) have no
    # clean Pallas equivalent; all their synthetic parameter matrices and the
    # per-pixel coordinate basis are folded into w_pix at init.
    smpl = smpl_ref[...]                                          # (B, 85)
    logits = jnp.dot(smpl, w_pix_ref[...],
                     preferred_element_type=jnp.float32)          # (B, CC*HW)

    # background mask = last cond channel, hard {0,1} ((fim == -1) analogue)
    bg = (logits[:, (CC - 1) * HW:] > 0.0).astype(jnp.float32)    # (B, HW)

    # ---- 3. util.morph(bg, ks=3, mode='erode') ------------------------------
    # pad value 1.0 + (3x3 sum == 9)  ==  no zero pixel inside the in-image
    # 3x3 neighbourhood.  erode_ref[q, p] = 1 iff q is an in-image neighbour
    # of p, so one MXU push counts the zero pixels around every p.  bg is
    # exactly {0,1} and counts are small integers -> the matmul is exact.
    zero_cnt = jnp.dot(1.0 - bg, erode_ref[...],
                       preferred_element_type=jnp.float32)        # (B, HW)
    eroded = (zero_cnt < 0.5).astype(jnp.float32)

    # ---- 4. output slab: direct channel-sliced stores (no stack/concat) -----
    #   [0:3] src_img (* (1 - crop_mask) when use_mask)
    #   [3:6] continuous cond channels       [6] bg mask     [7] crop mask
    img = img_ref[...]                                            # (B, 3, HW)
    if use_mask:
        img = img * (1.0 - eroded)[:, None, :]
    slab_ref[:, 0:C_IMG, :] = img
    for c in range(CC - 1):
        slab_ref[:, C_IMG + c, :] = jnp.tanh(logits[:, c * HW:(c + 1) * HW])
    slab_ref[:, C_OUT - 1, :] = bg
    slab_ref[:, C_OUT, :] = eroded


# advisory cost estimate (two tiny matmuls + elementwise + tanh)
_FLOPS = 2 * B * SMPL_DIM * CC * HW + 2 * B * HW * HW + 16 * B * HW
_TRANS = B * (CC - 1) * HW
_BYTES = 4 * (B * SMPL_DIM + B * C_IMG * HW + SMPL_DIM * CC * HW
              + HW * HW + B * C_SLAB * HW)


# ---------------------------------------------------------------------------
# Wrapper: one pallas_call, whole arrays resident in VMEM (no grid needed;
# footprint << 1 MiB). NCHW recovered by free contiguous reshapes/slices.
# ---------------------------------------------------------------------------
@functools.partial(jax.jit, static_argnames=("use_mask",))
def _forward(src_img, src_smpl, w_pix, erode_mat, use_mask):
    img_flat = src_img.reshape(B, C_IMG, HW)       # contiguous -> metadata only
    kern = functools.partial(_fused_kernel, use_mask=use_mask)
    slab = pl.pallas_call(
        kern,
        out_shape=jax.ShapeDtypeStruct((B, C_SLAB, HW), jnp.float32),
        in_specs=[pl.BlockSpec(memory_space=pltpu.MemorySpace.VMEM)] * 4,
        out_specs=pl.BlockSpec(memory_space=pltpu.MemorySpace.VMEM),
        cost_estimate=pl.CostEstimate(flops=_FLOPS, transcendentals=_TRANS,
                                      bytes_accessed=_BYTES),
    )(src_smpl, img_flat, w_pix, erode_mat)
    input_g_src = slab[:, :C_OUT].reshape(B, C_OUT, H, W)
    crop_mask = slab[:, C_OUT:].reshape(B, 1, H, W)
    return input_g_src, crop_mask


class BodyRecoveryFlowDP:
    def __init__(self, key):
        k1, k2 = jax.random.split(key)
        # deterministic synthetic parameters (shapes implied by the forward)
        w_verts = 0.05 * jax.random.normal(k1, (SMPL_DIM, NV * 3), jnp.float32)
        w_proj = 0.5 * jax.random.normal(k2, (NV * 3 + 3, 4, CC), jnp.float32)

        # cam = smpl[:, :3] selector, folded into the feature matrix so the
        # whole parameter path is one matmul inside the kernel.
        cam_sel = jnp.zeros((SMPL_DIM, 3), jnp.float32)
        cam_sel = cam_sel.at[jnp.arange(3), jnp.arange(3)].set(1.0)
        w_feats = jnp.concatenate([w_verts, cam_sel], axis=1)     # (85, NV*3+3)
        # w_alpha[f, c, g] = sum_v w_feats[f, v] * w_proj[v, g, c]
        w_alpha = jnp.einsum('fv,vgc->fcg', w_feats, w_proj)      # (85, CC, 4)

        # per-pixel coordinate basis, folded into the weights as well:
        lin = jnp.linspace(-1.0, 1.0, H)
        ys, xs = jnp.meshgrid(lin, lin, indexing="ij")
        coords = jnp.stack([xs.reshape(HW), ys.reshape(HW),
                            (xs * ys).reshape(HW),
                            jnp.ones((HW,), jnp.float32)], axis=0)  # (4, HW)
        # w_pix[f, c*HW + p] = sum_g w_alpha[f, c, g] * coords[g, p]
        self.w_pix = jnp.einsum('fcg,gp->fcp', w_alpha, coords).reshape(
            SMPL_DIM, CC * HW).astype(jnp.float32)                 # (85, 1024)

        # in-image 3x3 neighbour matrix for the erosion matmul:
        r = jnp.arange(HW) // W
        c = jnp.arange(HW) % W
        nbr = ((jnp.abs(r[:, None] - r[None, :]) <= 1) &
               (jnp.abs(c[:, None] - c[None, :]) <= 1))
        self.erode_mat = nbr.astype(jnp.float32)                   # (HW, HW)

    def forward(self, src_img, src_smpl, use_mask=False):
        return _forward(src_img, src_smpl, self.w_pix, self.erode_mat,
                        use_mask=use_mask)


def _erode_ref_jnp(m):
    """Pure-jnp util.morph(ks=3, mode='erode'): pad value 1.0, 3x3 sum == 9."""
    p = jnp.pad(m, ((0, 0), (1, 1), (1, 1)), constant_values=1.0)
    s = jnp.zeros_like(m)
    for dr in range(3):
        for dc in range(3):
            s = s + p[:, dr:dr + H, dc:dc + W]
    return (s > 8.5).astype(jnp.float32)


if __name__ == "__main__":
    key = jax.random.PRNGKey(0)
    ki, ks = jax.random.split(key)
    src_img = jax.random.uniform(ki, (B, C_IMG, H, W), jnp.float32,
                                 minval=-1.0, maxval=1.0)
    src_smpl = jax.random.normal(ks, (B, SMPL_DIM), jnp.float32)

    model = BodyRecoveryFlowDP(jax.random.PRNGKey(42))
    out_m, mask_m = model.forward(src_img, src_smpl, use_mask=True)
    out_n, mask_n = model.forward(src_img, src_smpl, use_mask=False)
    jax.block_until_ready((out_m, mask_m, out_n, mask_n))

    assert out_m.shape == (B, C_OUT, H, W) and out_n.shape == (B, C_OUT, H, W)
    assert mask_m.shape == (B, 1, H, W) and mask_n.shape == (B, 1, H, W)
    # crop mask is a hard {0,1} map and independent of use_mask
    assert bool(jnp.all((mask_m == 0.0) | (mask_m == 1.0)))
    assert bool(jnp.all(mask_m == mask_n))
    # cond channels are independent of use_mask
    assert bool(jnp.allclose(out_m[:, C_IMG:], out_n[:, C_IMG:]))
    # use_mask=False keeps the raw image; use_mask=True masks it with the crop mask
    assert bool(jnp.allclose(out_n[:, :C_IMG], src_img))
    assert bool(jnp.allclose(out_m[:, :C_IMG], src_img * (1.0 - mask_m),
                             atol=1e-6))
    # in-kernel erosion matches a pure-jnp util.morph(ks=3, 'erode') reference
    bg_from_kernel = out_m[:, C_OUT - 1]                   # (B, H, W), binary
    assert bool(jnp.all(_erode_ref_jnp(bg_from_kernel) == mask_m[:, 0]))
    print("KERNEL_OK")
</pallas_src>

<mosaic_0001>
module attributes {stable_mosaic.version = 11 : i64} {
  func.func @_fused_kernel(%arg0: memref<2x85xf32, #tpu.memory_space<vmem>>, %arg1: memref<2x3x256xf32, #tpu.memory_space<vmem>>, %arg2: memref<85x1024xf32, #tpu.memory_space<vmem>>, %arg3: memref<256x256xf32, #tpu.memory_space<vmem>>, %arg4: memref<2x8x256xf32, #tpu.memory_space<vmem>>) attributes {dimension_semantics = [], scalar_prefetch = 0 : i64, scratch_operands = 0 : i64, tpu.core_type = #tpu.core_type<tc>} {
    %c0 = arith.constant 0 : index
    %c0_0 = arith.constant 0 : index
    %0 = vector.load %arg0[%c0, %c0_0] : memref<2x85xf32, #tpu.memory_space<vmem>>, vector<2x85xf32>
    %c0_1 = arith.constant 0 : index
    %c0_2 = arith.constant 0 : index
    %1 = vector.load %arg2[%c0_1, %c0_2] : memref<85x1024xf32, #tpu.memory_space<vmem>>, vector<85x1024xf32>
    %cst = arith.constant dense<0.000000e+00> : vector<2x1024xf32>
    %2 = tpu.matmul %0, %1, %cst {dimension_numbers = #tpu.dot_dimension_numbers<[1], [0], [0], [1], [0, 0, 1, 1], [], []>} : vector<2x85xf32>, vector<85x1024xf32>, vector<2x1024xf32> -> vector<2x1024xf32>
    %3 = vector.extract_strided_slice %2 {offsets = [0, 768], sizes = [2, 256], strides = [1, 1]} : vector<2x1024xf32> to vector<2x256xf32>
    %cst_3 = arith.constant 0.000000e+00 : f32
    %4 = vector.broadcast %cst_3 : f32 to vector<2x256xf32>
    %5 = arith.cmpf ogt, %3, %4 : vector<2x256xf32>
    %6 = arith.extui %5 : vector<2x256xi1> to vector<2x256xi32>
    %7 = arith.sitofp %6 : vector<2x256xi32> to vector<2x256xf32>
    %cst_4 = arith.constant 1.000000e+00 : f32
    %8 = vector.broadcast %cst_4 : f32 to vector<2x256xf32>
    %9 = arith.subf %8, %7 : vector<2x256xf32>
    %c0_5 = arith.constant 0 : index
    %c0_6 = arith.constant 0 : index
    %10 = vector.load %arg3[%c0_5, %c0_6] : memref<256x256xf32, #tpu.memory_space<vmem>>, vector<256x256xf32>
    %cst_7 = arith.constant dense<0.000000e+00> : vector<2x256xf32>
    %11 = tpu.matmul %9, %10, %cst_7 {dimension_numbers = #tpu.dot_dimension_numbers<[1], [0], [0], [1], [0, 0, 1, 1], [], []>} : vector<2x256xf32>, vector<256x256xf32>, vector<2x256xf32> -> vector<2x256xf32>
    %cst_8 = arith.constant 5.000000e-01 : f32
    %12 = vector.broadcast %cst_8 : f32 to vector<2x256xf32>
    %13 = arith.cmpf olt, %11, %12 : vector<2x256xf32>
    %14 = arith.extui %13 : vector<2x256xi1> to vector<2x256xi32>
    %15 = arith.sitofp %14 : vector<2x256xi32> to vector<2x256xf32>
    %c0_9 = arith.constant 0 : index
    %c0_10 = arith.constant 0 : index
    %c0_11 = arith.constant 0 : index
    %16 = vector.load %arg1[%c0_9, %c0_10, %c0_11] : memref<2x3x256xf32, #tpu.memory_space<vmem>>, vector<2x3x256xf32>
    %cst_12 = arith.constant 1.000000e+00 : f32
    %17 = vector.broadcast %cst_12 : f32 to vector<2x256xf32>
    %18 = arith.subf %17, %15 : vector<2x256xf32>
    %19 = vector.shape_cast %18 : vector<2x256xf32> to vector<2x1x256xf32>
    %20 = vector.broadcast %19 : vector<2x1x256xf32> to vector<2x3x256xf32>
    %21 = arith.mulf %16, %20 : vector<2x3x256xf32>
    %c0_13 = arith.constant 0 : index
    %c0_14 = arith.constant 0 : index
    %c0_15 = arith.constant 0 : index
    %22 = vector.load %arg4[%c0_13, %c0_14, %c0_15] : memref<2x8x256xf32, #tpu.memory_space<vmem>>, vector<2x3x256xf32>
    tpu.vector_store %arg4[%c0_13, %c0_14, %c0_15], %21 {strides = array<i32>} : memref<2x8x256xf32, #tpu.memory_space<vmem>>, vector<2x3x256xf32>,
    %23 = vector.extract_strided_slice %2 {offsets = [0, 0], sizes = [2, 256], strides = [1, 1]} : vector<2x1024xf32> to vector<2x256xf32>
    %24 = math.tanh %23 : vector<2x256xf32>
    %c0_16 = arith.constant 0 : index
    %c3 = arith.constant 3 : index
    %c0_17 = arith.constant 0 : index
    %25 = vector.load %arg4[%c0_16, %c3, %c0_17] : memref<2x8x256xf32, #tpu.memory_space<vmem>>, vector<2x1x256xf32>
    %26 = vector.shape_cast %25 : vector<2x1x256xf32> to vector<2x256xf32>
    %27 = vector.shape_cast %24 : vector<2x256xf32> to vector<2x1x256xf32>
    tpu.vector_store %arg4[%c0_16, %c3, %c0_17], %27 {strides = array<i32>} : memref<2x8x256xf32, #tpu.memory_space<vmem>>, vector<2x1x256xf32>,
    %28 = vector.extract_strided_slice %2 {offsets = [0, 256], sizes = [2, 256], strides = [1, 1]} : vector<2x1024xf32> to vector<2x256xf32>
    %29 = math.tanh %28 : vector<2x256xf32>
    %c0_18 = arith.constant 0 : index
    %c4 = arith.constant 4 : index
    %c0_19 = arith.constant 0 : index
    %30 = vector.load %arg4[%c0_18, %c4, %c0_19] : memref<2x8x256xf32, #tpu.memory_space<vmem>>, vector<2x1x256xf32>
    %31 = vector.shape_cast %30 : vector<2x1x256xf32> to vector<2x256xf32>
    %32 = vector.shape_cast %29 : vector<2x256xf32> to vector<2x1x256xf32>
    tpu.vector_store %arg4[%c0_18, %c4, %c0_19], %32 {strides = array<i32>} : memref<2x8x256xf32, #tpu.memory_space<vmem>>, vector<2x1x256xf32>,
    %33 = vector.extract_strided_slice %2 {offsets = [0, 512], sizes = [2, 256], strides = [1, 1]} : vector<2x1024xf32> to vector<2x256xf32>
    %34 = math.tanh %33 : vector<2x256xf32>
    %c0_20 = arith.constant 0 : index
    %c5 = arith.constant 5 : index
    %c0_21 = arith.constant 0 : index
    %35 = vector.load %arg4[%c0_20, %c5, %c0_21] : memref<2x8x256xf32, #tpu.memory_space<vmem>>, vector<2x1x256xf32>
    %36 = vector.shape_cast %35 : vector<2x1x256xf32> to vector<2x256xf32>
    %37 = vector.shape_cast %34 : vector<2x256xf32> to vector<2x1x256xf32>
    tpu.vector_store %arg4[%c0_20, %c5, %c0_21], %37 {strides = array<i32>} : memref<2x8x256xf32, #tpu.memory_space<vmem>>, vector<2x1x256xf32>,
    %c0_22 = arith.constant 0 : index
    %c6 = arith.constant 6 : index
    %c0_23 = arith.constant 0 : index
    %38 = vector.load %arg4[%c0_22, %c6, %c0_23] : memref<2x8x256xf32, #tpu.memory_space<vmem>>, vector<2x1x256xf32>
    %39 = vector.shape_cast %38 : vector<2x1x256xf32> to vector<2x256xf32>
    %40 = vector.shape_cast %7 : vector<2x256xf32> to vector<2x1x256xf32>
    tpu.vector_store %arg4[%c0_22, %c6, %c0_23], %40 {strides = array<i32>} : memref<2x8x256xf32, #tpu.memory_space<vmem>>, vector<2x1x256xf32>,
    %c0_24 = arith.constant 0 : index
    %c7 = arith.constant 7 : index
    %c0_25 = arith.constant 0 : index
    %41 = vector.load %arg4[%c0_24, %c7, %c0_25] : memref<2x8x256xf32, #tpu.memory_space<vmem>>, vector<2x1x256xf32>
    %42 = vector.shape_cast %41 : vector<2x1x256xf32> to vector<2x256xf32>
    %43 = vector.shape_cast %15 : vector<2x256xf32> to vector<2x1x256xf32>
    tpu.vector_store %arg4[%c0_24, %c7, %c0_25], %43 {strides = array<i32>} : memref<2x8x256xf32, #tpu.memory_space<vmem>>, vector<2x1x256xf32>,
    return
  }
}

</mosaic_0001>

<bundles_post_ra>
// kernel: _forward.1
= control target key start
LH: loop header
LB: loop body
LE: loop exit
PB: predicated region body
PF: predicated region fallthrough
CT: control target
= control target key end

     0   :  { %9 = vsyncpa [#allocation3], 0  ;;  %s1093_s0 = inlined_call_operand.vmem [shape: f32[2,85], index: 0, kind: input, shape index: {}]   ;;  %s1094_s1 = inlined_call_operand.vmem [shape: f32[2,3,256], index: 1, kind: input, shape index: {}]   ;;  %s1095_s2 = inlined_call_operand.hbm [shape: f32[85,1024], index: 2, kind: input, shape index: {}]   ;;  %s1096_s3 = inlined_call_operand.hbm [shape: f32[256,256], index: 3, kind: input, shape index: {}]   ;;  %s1097_s4 = inlined_call_operand.vmem [shape: f32[2,8,256], index: 4, kind: output, shape index: {}]  }
   0x1   :  { %10 = vsyncpa [#allocation5], 0  ;;  %s928_s15 = smov [#allocation2]  }
   0x2   :  { %s20_s16 = sshll.u32 %s928_s15, 4  ;;  %s21_s16 = int_to_ptr.vmem [resolvable:$true] %s20_s16 }
   0x3   :  { %s892_s17 = scalar_lea.vmem %s21_s16, 11264  ;;  %p897_p1 = scmp.lt.s32.totalorder %s21_s16, %s21_s16 }
   0x4   :  { %p893_p0 = scmp.ne.s32.totalorder %s21_s16, %s892_s17  ;;  %p898_p2 = scmp.lt.s32.totalorder %s892_s17, %s892_s17 }
   0x6   :  { %p899_p3 = por %p898_p2, %p897_p1 }
   0x8   :  { %p900_p4 = pnand %p899_p3, %p893_p0 }
   0xa   :  { %903 = shalt.err (!%p900_p4)
}
   0xb   :  { %s929_s18 = smov 1024   ;;  %s930_s19 = smov 64  }
   0xc   :  { %26 = dma.hbm_to_vmem [thread:$0]  %s1095_s2, 11264, %s21_s16, [#allocation3], %s929_s18, %s929_s18, %s930_s19  }
   0xd   :  { %s931_s22 = smov [#allocation4]  }
   0xe   :  { %s32_s23 = sshll.u32 %s931_s22, 4  ;;  %s33_s23 = int_to_ptr.vmem [resolvable:$true] %s32_s23 }
   0xf   :  { %s912_s24 = scalar_lea.vmem %s33_s23, 8192  ;;  %p917_p6 = scmp.lt.s32.totalorder %s33_s23, %s33_s23 }
  0x10   :  { %p913_p5 = scmp.ne.s32.totalorder %s33_s23, %s912_s24  ;;  %p918_p7 = scmp.lt.s32.totalorder %s912_s24, %s912_s24 }
  0x12   :  { %p919_p8 = por %p918_p7, %p917_p6 }
  0x14   :  { %p920_p9 = pnand %p919_p8, %p913_p5 }
  0x16   :  { %923 = shalt.err (!%p920_p9)
}
  0x17   :  { %s932_s25 = smov 256   ;;  %s933_s26 = smov 16  }
  0x18   :  { %38 = dma.hbm_to_vmem [thread:$0]  %s1096_s3, 8192, %s33_s23, [#allocation5], %s932_s25, %s932_s25, %s933_s26  }
  0x19   :  { %924 = dma.done.wait [#allocation3], 11264  }
  0x1a   :  { %925 = vsyncadd [#allocation3], 4294956032 }
  0x1b   :  { %926 = dma.done.wait [#allocation5], 8192  }
  0x1c   :  { %927 = vsyncadd [#allocation5], 4294959104  ;;  %v934_v0 = vmov 0.0   ;;  %vm138_vm0 = vcmask 1044480   ;;  %v127_v1 = vld [vmem:[#allocation2 + $0x288] sm:$0x1f] }
  0x1d   :  { %227 = vmatprep.mubr.f32.mxu1 %v934_v0  ;;  %369 = vmatprep.mubr.f32.mxu0 %v934_v0  ;;  %v126_v2 = vld [vmem:[#allocation2 + $0x280] sm:$0x1f]  ;;  %v119_v3 = vld [vmem:[#allocation2 + $0x248] sm:$0xff]  ;;  %vm134_vm1 = vcmask 695296   ;;  %v129_v24 = vld [vmem:[#allocation2 + $0x298] sm:$0x1f] }
  0x1e   :  { %838 = vmatprep.subr.msk.mxu1 %vm138_vm0, %v127_v1  ;;  %v118_v4 = vld [vmem:[#allocation2 + $0x240] sm:$0xff]  ;;  %v111_v5 = vld [vmem:[#allocation2 + $0x208] sm:$0xff]  ;;  %v128_v25 = vld [vmem:[#allocation2 + $0x290] sm:$0x1f] }
  0x1f   :  { %839 = vmatpush1.msk.msra.mxu1 %vm138_vm0, %v126_v2  ;;  %v110_v6 = vld [vmem:[#allocation2 + $0x200] sm:$0xff]  ;;  %v103_v7 = vld [vmem:[#allocation2 + $0x1c8] sm:$0xff]  ;;  %v121_v26 = vld [vmem:[#allocation2 + $0x258] sm:$0xff] }
  0x20   :  { %175 = vmatprep.subr.mxu1 %v119_v3  ;;  %v102_v8 = vld [vmem:[#allocation2 + $0x1c0] sm:$0xff]  ;;  %v95_v9 = vld [vmem:[#allocation2 + $0x188] sm:$0xff]  ;;  %v120_v28 = vld [vmem:[#allocation2 + $0x250] sm:$0xff] }
  0x21   :  { %176 = vmatpush1.msra.mxu1 %v118_v4  ;;  %v94_v10 = vld [vmem:[#allocation2 + $0x180] sm:$0xff]  ;;  %v87_v11 = vld [vmem:[#allocation2 + $0x148] sm:$0xff]  ;;  %v113_v30 = vld [vmem:[#allocation2 + $0x218] sm:$0xff] }
  0x22   :  { %177 = vmatprep.subr.mxu1 %v111_v5  ;;  %v86_v12 = vld [vmem:[#allocation2 + $0x140] sm:$0xff]  ;;  %v79_v13 = vld [vmem:[#allocation2 + $0x108] sm:$0xff]  ;;  %v112_v32 = vld [vmem:[#allocation2 + $0x210] sm:$0xff] }
  0x23   :  { %178 = vmatpush1.msra.mxu1 %v110_v6  ;;  %v78_v14 = vld [vmem:[#allocation2 + $0x100] sm:$0xff]  ;;  %v71_v15 = vld [vmem:[#allocation2 + $0xc8] sm:$0xff]  ;;  %v105_v34 = vld [vmem:[#allocation2 + $0x1d8] sm:$0xff] }
  0x24   :  { %179 = vmatprep.subr.mxu1 %v103_v7  ;;  %v70_v16 = vld [vmem:[#allocation2 + $0xc0] sm:$0xff]  ;;  %v63_v17 = vld [vmem:[#allocation2 + $0x88] sm:$0xff]  ;;  %v104_v36 = vld [vmem:[#allocation2 + $0x1d0] sm:$0xff] }
  0x25   :  { %180 = vmatpush1.msra.mxu1 %v102_v8  ;;  %v62_v18 = vld [vmem:[#allocation2 + $0x80] sm:$0xff]  ;;  %v55_v19 = vld [vmem:[#allocation2 + $0x48] sm:$0xff]  ;;  %v97_v38 = vld [vmem:[#allocation2 + $0x198] sm:$0xff] }
  0x26   :  { %181 = vmatprep.subr.mxu1 %v95_v9  ;;  %v54_v20 = vld [vmem:[#allocation2 + $0x40] sm:$0xff]  ;;  %v47_v21 = vld [vmem:[#allocation2 + $0x8] sm:$0xff]  ;;  %v96_v40 = vld [vmem:[#allocation2 + $0x190] sm:$0xff] }
  0x27   :  { %182 = vmatpush1.msra.mxu1 %v94_v10  ;;  %v46_v22 = vld [vmem:[#allocation2] sm:$0xff]  ;;  %v131_v27 = vld [vmem:[#allocation2 + $0x2a8] sm:$0x1f]  ;;  %v89_v42 = vld [vmem:[#allocation2 + $0x158] sm:$0xff] }
  0x28   :  { %183 = vmatprep.subr.mxu1 %v87_v11  ;;  %v974_v23 = vld [vmem:[%s1093_s0] sm:$0x3]  ;;  %v123_v31 = vld [vmem:[#allocation2 + $0x268] sm:$0xff]  ;;  %844 = vmatprep.subr.msk.mxu0 %vm138_vm0, %v131_v27  ;;  %v88_v44 = vld [vmem:[#allocation2 + $0x150] sm:$0xff] }
  0x29   :  { %184 = vmatpush1.msra.mxu1 %v86_v12  ;;  %v130_v29 = vld [vmem:[#allocation2 + $0x2a0] sm:$0x1f]  ;;  %v115_v35 = vld [vmem:[#allocation2 + $0x228] sm:$0xff]  ;;  %v81_v46 = vld [vmem:[#allocation2 + $0x118] sm:$0xff] }
  0x2a   :  { %185 = vmatprep.subr.mxu1 %v79_v13  ;;  %v122_v33 = vld [vmem:[#allocation2 + $0x260] sm:$0xff]  ;;  %845 = vmatpush1.msk.msra.mxu0 %vm138_vm0, %v130_v29  ;;  %v107_v39 = vld [vmem:[#allocation2 + $0x1e8] sm:$0xff]  ;;  %v80_v48 = vld [vmem:[#allocation2 + $0x110] sm:$0xff] }
  0x2b   :  { %186 = vmatpush1.msra.mxu1 %v78_v14  ;;  %317 = vmatprep.subr.mxu0 %v123_v31  ;;  %v114_v37 = vld [vmem:[#allocation2 + $0x220] sm:$0xff]  ;;  %v99_v43 = vld [vmem:[#allocation2 + $0x1a8] sm:$0xff]  ;;  %v73_v50 = vld [vmem:[#allocation2 + $0xd8] sm:$0xff] }
  0x2c   :  { %187 = vmatprep.subr.mxu1 %v71_v15  ;;  %318 = vmatpush1.msra.mxu0 %v122_v33  ;;  %v106_v41 = vld [vmem:[#allocation2 + $0x1e0] sm:$0xff]  ;;  %v91_v47 = vld [vmem:[#allocation2 + $0x168] sm:$0xff]  ;;  %v72_v52 = vld [vmem:[#allocation2 + $0xd0] sm:$0xff] }
  0x2d   :  { %188 = vmatpush1.msra.mxu1 %v70_v16  ;;  %319 = vmatprep.subr.mxu0 %v115_v35  ;;  %v98_v45 = vld [vmem:[#allocation2 + $0x1a0] sm:$0xff]  ;;  %v83_v51 = vld [vmem:[#allocation2 + $0x128] sm:$0xff]  ;;  %v65_v54 = vld [vmem:[#allocation2 + $0x98] sm:$0xff] }
  0x2e   :  { %189 = vmatprep.subr.mxu1 %v63_v17  ;;  %320 = vmatpush1.msra.mxu0 %v114_v37  ;;  %v90_v49 = vld [vmem:[#allocation2 + $0x160] sm:$0xff]  ;;  %v75_v55 = vld [vmem:[#allocation2 + $0xe8] sm:$0xff]  ;;  %v64_v56 = vld [vmem:[#allocation2 + $0x90] sm:$0xff] }
  0x2f   :  { %190 = vmatpush1.msra.mxu1 %v62_v18  ;;  %321 = vmatprep.subr.mxu0 %v107_v39  ;;  %v82_v53 = vld [vmem:[#allocation2 + $0x120] sm:$0xff]  ;;  %v57_v58 = vld [vmem:[#allocation2 + $0x58] sm:$0xff]  ;;  %v67_v59 = vld [vmem:[#allocation2 + $0xa8] sm:$0xff] }
  0x30   :  { %191 = vmatprep.subr.mxu1 %v55_v19  ;;  %322 = vmatpush1.msra.mxu0 %v106_v41  ;;  %v74_v57 = vld [vmem:[#allocation2 + $0xe0] sm:$0xff]  ;;  %v56_v60 = vld [vmem:[#allocation2 + $0x50] sm:$0xff]  ;;  %v49_v62 = vld [vmem:[#allocation2 + $0x18] sm:$0xff] }
  0x31   :  { %192 = vmatpush1.msra.mxu1 %v54_v20  ;;  %323 = vmatprep.subr.mxu0 %v99_v43  ;;  %v66_v61 = vld [vmem:[#allocation2 + $0xa0] sm:$0xff]  ;;  %v59_v63 = vld [vmem:[#allocation2 + $0x68] sm:$0xff]  ;;  %v48_v1 = vld [vmem:[#allocation2 + $0x10] sm:$0xff] }
  0x32   :  { %193 = vmatprep.subr.mxu1 %v47_v21  ;;  %324 = vmatpush1.msra.mxu0 %v98_v45  ;;  %v58_v2 = vld [vmem:[#allocation2 + $0x60] sm:$0xff]  ;;  %v133_v3 = vld [vmem:[#allocation2 + $0x2b8] sm:$0x1f]  ;;  %v132_v4 = vld [vmem:[#allocation2 + $0x2b0] sm:$0x1f] }
  0x33   :  { %194 = vmatpush1.msra.mxu1 %v46_v22  ;;  %325 = vmatprep.subr.mxu0 %v91_v47  ;;  %v125_v5 = vld [vmem:[#allocation2 + $0x278] sm:$0xff]  ;;  %v51_v6 = vld [vmem:[#allocation2 + $0x28] sm:$0xff]  ;;  %v124_v7 = vld [vmem:[#allocation2 + $0x270] sm:$0xff] }
  0x34   :  { %840 = vmatmul.mubr.msk.f32.vlgmr.msra.gmra.mxu1 %vm134_vm1, %v974_v23  ;;  %841 = vmatprep.subr.msk.mxu1 %vm138_vm0, %v129_v24  ;;  %v50_v8 = vld [vmem:[#allocation2 + $0x20] sm:$0xff]  ;;  %v117_v9 = vld [vmem:[#allocation2 + $0x238] sm:$0xff]  ;;  %v116_v10 = vld [vmem:[#allocation2 + $0x230] sm:$0xff] }
  0x35   :  { %842 = vmatpush1.msk.msra.mxu1 %vm138_vm0, %v128_v25  ;;  %298 = vmatprep.mubr.f32.mxu1 %v934_v0  ;;  %v486_v11 = vld [vmem:[#allocation4 + $0xf8] sm:$0xff]  ;;  %v485_v13 = vld [vmem:[#allocation4 + $0xf0] sm:$0xff]  ;;  %v484_v15 = vld [vmem:[#allocation4 + $0xe8] sm:$0xff] }
  0x36   :  { %246 = vmatprep.subr.mxu1 %v121_v26  ;;  %326 = vmatpush1.msra.mxu0 %v90_v49  ;;  %v109_v12 = vld [vmem:[#allocation2 + $0x1f8] sm:$0xff]  ;;  %v108_v14 = vld [vmem:[#allocation2 + $0x1f0] sm:$0xff]  ;;  %v483_v17 = vld [vmem:[#allocation4 + $0xe0] sm:$0xff] }
  0x37   :  { %247 = vmatpush1.msra.mxu1 %v120_v28  ;;  %327 = vmatprep.subr.mxu0 %v83_v51  ;;  %v101_v16 = vld [vmem:[#allocation2 + $0x1b8] sm:$0xff]  ;;  %v100_v18 = vld [vmem:[#allocation2 + $0x1b0] sm:$0xff]  ;;  %v480_v24 = vld [vmem:[#allocation4 + $0xc8] sm:$0xff] }
  0x38   :  { %248 = vmatprep.subr.mxu1 %v113_v30  ;;  %328 = vmatpush1.msra.mxu0 %v82_v53  ;;  %v482_v19 = vld [vmem:[#allocation4 + $0xd8] sm:$0xff]  ;;  %v481_v21 = vld [vmem:[#allocation4 + $0xd0] sm:$0xff]  ;;  %v479_v26 = vld [vmem:[#allocation4 + $0xc0] sm:$0xff] }
  0x39   :  { %249 = vmatpush1.msra.mxu1 %v112_v32  ;;  %329 = vmatprep.subr.mxu0 %v75_v55  ;;  %v93_v20 = vld [vmem:[#allocation2 + $0x178] sm:$0xff]  ;;  %v92_v22 = vld [vmem:[#allocation2 + $0x170] sm:$0xff]  ;;  %v476_v32 = vld [vmem:[#allocation4 + $0xa8] sm:$0xff] }
  0x3a   :  { %250 = vmatprep.subr.mxu1 %v105_v34  ;;  %330 = vmatpush1.msra.mxu0 %v74_v57  ;;  %v85_v25 = vld [vmem:[#allocation2 + $0x138] sm:$0xff]  ;;  %v84_v27 = vld [vmem:[#allocation2 + $0x130] sm:$0xff]  ;;  %v475_v34 = vld [vmem:[#allocation4 + $0xa0] sm:$0xff] }
  0x3b   :  { %251 = vmatpush1.msra.mxu1 %v104_v36  ;;  %331 = vmatprep.subr.mxu0 %v67_v59  ;;  %v478_v28 = vld [vmem:[#allocation4 + $0xb8] sm:$0xff]  ;;  %v477_v30 = vld [vmem:[#allocation4 + $0xb0] sm:$0xff]  ;;  %v471_v43 = vld [vmem:[#allocation4 + $0x80] sm:$0xff] }
  0x3c   :  { %252 = vmatprep.subr.mxu1 %v97_v38  ;;  %332 = vmatpush1.msra.mxu0 %v66_v61  ;;  %v77_v29 = vld [vmem:[#allocation2 + $0xf8] sm:$0xff]  ;;  %v76_v31 = vld [vmem:[#allocation2 + $0xf0] sm:$0xff]  ;;  %v467_v47 = vld [vmem:[#allocation4 + $0x60] sm:$0xff] }
  0x3d   :  { %253 = vmatpush1.msra.mxu1 %v96_v40  ;;  %333 = vmatprep.subr.mxu0 %v59_v63  ;;  %v69_v33 = vld [vmem:[#allocation2 + $0xb8] sm:$0xff]  ;;  %v68_v35 = vld [vmem:[#allocation2 + $0xb0] sm:$0xff]  ;;  %v460_v53 = vld [vmem:[#allocation4 + $0x28] sm:$0xff] }
  0x3e   :  { %254 = vmatprep.subr.mxu1 %v89_v42  ;;  %334 = vmatpush1.msra.mxu0 %v58_v2  ;;  %v61_v36 = vld [vmem:[#allocation2 + $0x78] sm:$0xff]  ;;  %v60_v37 = vld [vmem:[#allocation2 + $0x70] sm:$0xff]  ;;  %v472_v42 = vld [vmem:[#allocation4 + $0x88] sm:$0xff] }
  0x3f   :  { %255 = vmatpush1.msra.mxu1 %v88_v44  ;;  %335 = vmatprep.subr.mxu0 %v51_v6  ;;  %v53_v38 = vld [vmem:[#allocation2 + $0x38] sm:$0xff]  ;;  %v52_v39 = vld [vmem:[#allocation2 + $0x30] sm:$0xff]  ;;  %v456_v57 = vld [vmem:[#allocation4 + $0x8] sm:$0xff] }
  0x40   :  { %256 = vmatprep.subr.mxu1 %v81_v46  ;;  %336 = vmatpush1.msra.mxu0 %v50_v8  ;;  %v474_v40 = vld [vmem:[#allocation4 + $0x98] sm:$0xff]  ;;  %v473_v41 = vld [vmem:[#allocation4 + $0x90] sm:$0xff]  ;;  %v468_v46 = vld [vmem:[#allocation4 + $0x68] sm:$0xff] }
  0x41   :  { %257 = vmatpush1.msra.mxu1 %v80_v48  ;;  %846 = vmatmul.mubr.msk.f32.vlgmr.msra.gmra.mxu0 %vm134_vm1, %v974_v23  ;;  %v470_v44 = vld [vmem:[#allocation4 + $0x78] sm:$0xff]  ;;  %v469_v45 = vld [vmem:[#allocation4 + $0x70] sm:$0xff]  ;;  %v516_v61 = vld [vmem:[#allocation4 + $0x1e8] sm:$0xff] }
  0x42   :  { %258 = vmatprep.subr.mxu1 %v73_v50  ;;  %519 = vmatprep.subr.mxu0 %v486_v11  ;;  %v466_v48 = vld [vmem:[#allocation4 + $0x58] sm:$0xff]  ;;  %v465_v49 = vld [vmem:[#allocation4 + $0x50] sm:$0xff]  ;;  %v463_v50 = vld [vmem:[#allocation4 + $0x40] sm:$0xff] }
  0x43   :  { %259 = vmatpush1.msra.mxu1 %v72_v52  ;;  %520 = vmatpush1.msra.mxu0 %v485_v13  ;;  %v462_v51 = vld [vmem:[#allocation4 + $0x38] sm:$0xff]  ;;  %v461_v52 = vld [vmem:[#allocation4 + $0x30] sm:$0xff]  ;;  %v512_v2 = vld [vmem:[#allocation4 + $0x1c8] sm:$0xff] }
  0x44   :  { %260 = vmatprep.subr.mxu1 %v65_v54  ;;  %521 = vmatprep.subr.mxu0 %v484_v15  ;;  %v459_v54 = vld [vmem:[#allocation4 + $0x20] sm:$0xff]  ;;  %v458_v55 = vld [vmem:[#allocation4 + $0x18] sm:$0xff]  ;;  %v508_v6 = vld [vmem:[#allocation4 + $0x1a8] sm:$0xff] }
  0x45   :  { %261 = vmatpush1.msra.mxu1 %v64_v56  ;;  %522 = vmatpush1.msra.mxu0 %v483_v17  ;;  %v457_v56 = vld [vmem:[#allocation4 + $0x10] sm:$0xff]  ;;  %v518_v59 = vld [vmem:[#allocation4 + $0x1f8] sm:$0xff]  ;;  %v503_v11 = vld [vmem:[#allocation4 + $0x180] sm:$0xff] }
  0x46   :  { %262 = vmatprep.subr.mxu1 %v57_v58  ;;  %523 = vmatprep.subr.mxu0 %v482_v19  ;;  %v455_v58 = vld [vmem:[#allocation4] sm:$0xff]  ;;  %v514_v63 = vld [vmem:[#allocation4 + $0x1d8] sm:$0xff]  ;;  %v501_v13 = vld [vmem:[#allocation4 + $0x170] sm:$0xff] }
  0x47   :  { %263 = vmatpush1.msra.mxu1 %v56_v60  ;;  %524 = vmatpush1.msra.mxu0 %v481_v21  ;;  %v517_v60 = vld [vmem:[#allocation4 + $0x1f0] sm:$0xff]  ;;  %v506_v8 = vld [vmem:[#allocation4 + $0x198] sm:$0xff]  ;;  %v499_v15 = vld [vmem:[#allocation4 + $0x160] sm:$0xff] }
  0x48   :  { %264 = vmatprep.subr.mxu1 %v49_v62  ;;  %525 = vmatprep.subr.mxu0 %v480_v24  ;;  %v515_v62 = vld [vmem:[#allocation4 + $0x1e0] sm:$0xff]  ;;  %v497_v17 = vld [vmem:[#allocation4 + $0x150] sm:$0xff] }
  0x49   :  { %265 = vmatpush1.msra.mxu1 %v48_v1  ;;  %526 = vmatpush1.msra.mxu0 %v479_v26  ;;  %v513_v1 = vld [vmem:[#allocation4 + $0x1d0] sm:$0xff]  ;;  %v495_v19 = vld [vmem:[#allocation4 + $0x140] sm:$0xff] }
  0x4a   :  { %843 = vmatmul.mubr.msk.f32.vlgmr.msra.gmra.mxu1 %vm134_vm1, %v974_v23  ;;  %847 = vmatprep.subr.msk.mxu1 %vm138_vm0, %v133_v3  ;;  %v511_v3 = vld [vmem:[#allocation4 + $0x1c0] sm:$0xff]  ;;  %v493_v21 = vld [vmem:[#allocation4 + $0x130] sm:$0xff] }
  0x4b   :  { %848 = vmatpush1.msk.msra.mxu1 %vm138_vm0, %v132_v4  ;;  %440 = vmatprep.mubr.f32.mxu1 %v934_v0  ;;  %v510_v4 = vld [vmem:[#allocation4 + $0x1b8] sm:$0xff]  ;;  %v491_v24 = vld [vmem:[#allocation4 + $0x120] sm:$0xff]  ;;  %v489_v26 = vld [vmem:[#allocation4 + $0x110] sm:$0xff] }
  0x4c   :  { %388 = vmatprep.subr.mxu1 %v125_v5  ;;  %527 = vmatprep.subr.mxu0 %v478_v28  ;;  %v509_v5 = vld [vmem:[#allocation4 + $0x1b0] sm:$0xff]  ;;  %v487_v28 = vld [vmem:[#allocation4 + $0x100] sm:$0xff] }
  0x4d   :  { %389 = vmatpush1.msra.mxu1 %v124_v7  ;;  %528 = vmatpush1.msra.mxu0 %v477_v30  ;;  %v507_v7 = vld [vmem:[#allocation4 + $0x1a0] sm:$0xff] }
  0x4e   :  { %390 = vmatprep.subr.mxu1 %v117_v9  ;;  %529 = vmatprep.subr.mxu0 %v476_v32  ;;  %v505_v9 = vld [vmem:[#allocation4 + $0x190] sm:$0xff] }
  0x4f   :  { %391 = vmatpush1.msra.mxu1 %v116_v10  ;;  %530 = vmatpush1.msra.mxu0 %v475_v34  ;;  %v504_v10 = vld [vmem:[#allocation4 + $0x188] sm:$0xff] }
  0x50   :  { %392 = vmatprep.subr.mxu1 %v109_v12  ;;  %531 = vmatprep.subr.mxu0 %v474_v40  ;;  %v502_v12 = vld [vmem:[#allocation4 + $0x178] sm:$0xff] }
  0x51   :  { %393 = vmatpush1.msra.mxu1 %v108_v14  ;;  %532 = vmatpush1.msra.mxu0 %v473_v41  ;;  %v500_v14 = vld [vmem:[#allocation4 + $0x168] sm:$0xff] }
  0x52   :  { %394 = vmatprep.subr.mxu1 %v101_v16  ;;  %533 = vmatprep.subr.mxu0 %v472_v42  ;;  %v498_v16 = vld [vmem:[#allocation4 + $0x158] sm:$0xff] }
  0x53   :  { %395 = vmatpush1.msra.mxu1 %v100_v18  ;;  %534 = vmatpush1.msra.mxu0 %v471_v43  ;;  %v496_v18 = vld [vmem:[#allocation4 + $0x148] sm:$0xff] }
  0x54   :  { %396 = vmatprep.subr.mxu1 %v93_v20  ;;  %535 = vmatprep.subr.mxu0 %v470_v44  ;;  %v494_v20 = vld [vmem:[#allocation4 + $0x138] sm:$0xff] }
  0x55   :  { %397 = vmatpush1.msra.mxu1 %v92_v22  ;;  %536 = vmatpush1.msra.mxu0 %v469_v45  ;;  %v492_v22 = vld [vmem:[#allocation4 + $0x128] sm:$0xff] }
  0x56   :  { %398 = vmatprep.subr.mxu1 %v85_v25  ;;  %537 = vmatprep.subr.mxu0 %v468_v46  ;;  %v490_v25 = vld [vmem:[#allocation4 + $0x118] sm:$0xff] }
  0x57   :  { %399 = vmatpush1.msra.mxu1 %v84_v27  ;;  %538 = vmatpush1.msra.mxu0 %v467_v47  ;;  %v488_v27 = vld [vmem:[#allocation4 + $0x108] sm:$0xff] }
  0x58   :  { %400 = vmatprep.subr.mxu1 %v77_v29  ;;  %539 = vmatprep.subr.mxu0 %v466_v48 }
  0x59   :  { %401 = vmatpush1.msra.mxu1 %v76_v31  ;;  %540 = vmatpush1.msra.mxu0 %v465_v49  ;;  %v935_v31 = vmov 1966171168  }
  0x5a   :  { %402 = vmatprep.subr.mxu1 %v69_v33  ;;  %v604_v32 = vunpack.c.l.s4 %v935_v31  ;;  %v606_v33 = vlaneseq }
  0x5b   :  { %403 = vmatpush1.msra.mxu1 %v68_v35 }
  0x5c   :  { %404 = vmatprep.subr.mxu1 %v61_v36  ;;  %v605_v34 = vunpack.c.0.s8 %v604_v32  ;;  %v992_v35 = vshrl.u32 %v606_v33, 7  ;;  %vm998_vm2 = vcmp.lt.s32.totalorder %v606_v33, 256 }
  0x5d   :  { %405 = vmatpush1.msra.mxu1 %v60_v37 }
  0x5e   :  { %406 = vmatprep.subr.mxu1 %v53_v38  ;;  %v995_v37 = vsub.s32 %v605_v34, %v992_v35  ;;  %v597_v34 = vld [vmem:[%s1094_s1 + $0x8] sm:$0x77] }
  0x5f   :  { %407 = vmatpush1.msra.mxu1 %v52_v39 }
  0x60   :  { %849 = vmatmul.mubr.msk.f32.vlgmr.msra.gmra.mxu1 %vm134_vm1, %v974_v23  ;;  %v464_v23 = vld [vmem:[#allocation4 + $0x48] sm:$0xff] }
  0x61   :  { %541 = vmatprep.subr.mxu0 %v464_v23 }
  0x62   :  { %542 = vmatpush1.msra.mxu0 %v463_v50 }
  0x63   :  { %543 = vmatprep.subr.mxu0 %v462_v51 }
  0x64   :  { %544 = vmatpush1.msra.mxu0 %v461_v52 }
  0x65   :  { %545 = vmatprep.subr.mxu0 %v460_v53 }
  0x66   :  { %546 = vmatpush1.msra.mxu0 %v459_v54 }
  0x67   :  { %547 = vmatprep.subr.mxu0 %v458_v55 }
  0x68   :  { %548 = vmatpush1.msra.mxu0 %v457_v56 }
  0x69   :  { %549 = vmatprep.subr.mxu0 %v456_v57 }
  0x6a   :  { %550 = vmatpush1.msra.mxu0 %v455_v58 }
  0x6b   :  { %551 = vmatprep.subr.mxu0 %v518_v59 }
  0x6c   :  { %552 = vmatpush2.msra.mxu0 %v517_v60 }
  0x6d   :  { %553 = vmatprep.subr.mxu0 %v516_v61 }
  0x6e   :  { %554 = vmatpush2.msra.mxu0 %v515_v62 }
  0x6f   :  { %555 = vmatprep.subr.mxu0 %v514_v63 }
  0x70   :  { %556 = vmatpush2.msra.mxu0 %v513_v1 }
  0x71   :  { %557 = vmatprep.subr.mxu0 %v512_v2 }
  0x72   :  { %558 = vmatpush2.msra.mxu0 %v511_v3 }
  0x73   :  { %559 = vmatprep.subr.mxu0 %v510_v4 }
  0x74   :  { %560 = vmatpush2.msra.mxu0 %v509_v5 }
  0x75   :  { %561 = vmatprep.subr.mxu0 %v508_v6 }
  0x76   :  { %562 = vmatpush2.msra.mxu0 %v507_v7 }
  0x77   :  { %563 = vmatprep.subr.mxu0 %v506_v8 }
  0x78   :  { %564 = vmatpush2.msra.mxu0 %v505_v9 }
  0x79   :  { %565 = vmatprep.subr.mxu0 %v504_v10 }
  0x7a   :  { %566 = vmatpush2.msra.mxu0 %v503_v11 }
  0x7b   :  { %567 = vmatprep.subr.mxu0 %v502_v12 }
  0x7c   :  { %568 = vmatpush2.msra.mxu0 %v501_v13 }
  0x7d   :  { %569 = vmatprep.subr.mxu0 %v500_v14 }
  0x7e   :  { %570 = vmatpush2.msra.mxu0 %v499_v15 }
  0x7f   :  { %571 = vmatprep.subr.mxu0 %v498_v16 }
  0x80   :  { %572 = vmatpush2.msra.mxu0 %v497_v17 }
  0x81   :  { %573 = vmatprep.subr.mxu0 %v496_v18 }
  0x82   :  { %574 = vmatpush2.msra.mxu0 %v495_v19  ;;  %v627_v19 = vsub.s32 0, %v992_v35 }
  0x83   :  { %575 = vmatprep.subr.mxu0 %v494_v20 }
  0x84   :  { %576 = vmatpush2.msra.mxu0 %v493_v21  ;;  %v631_v21 = vsub.s32 1, %v992_v35 }
  0x85   :  { %577 = vmatprep.subr.mxu0 %v492_v22 }
  0x86   :  { %578 = vmatpush2.msra.mxu0 %v491_v24 }
  0x87   :  { %579 = vmatprep.subr.mxu0 %v490_v25 }
  0x88   :  { %580 = vmatpush2.msra.mxu0 %v489_v26 }
  0x89   :  { %581 = vmatprep.subr.mxu0 %v488_v27 }
  0x8a   :  { %582 = vmatpush2.msra.mxu0 %v487_v28 }
  0xf4   :  { %v229_v29 = vpop.f32.mrf.mxu1 }
  0xf5   :  { %872 = vtanh.f32 %v229_v29 }
  0xf6   :  { %v231_v30 = vpop.f32.mrf.mxu1 }
  0xf7   :  { %874 = vtanh.f32 %v231_v30  ;;  %v596_v30 = vld [vmem:[%s1094_s1] sm:$0x77] }
 0x101   :  { %v371_v47 = vpop.f32.mrf.mxu0 }
 0x102   :  { %v873_v36 = vpop.eup %872 }
 0x103   :  { %v373_v48 = vpop.f32.mrf.mxu0 }
 0x104   :  { %v875_v38 = vpop.eup %874 }
 0x105   :  { %v661_v39 = vcombine.low %v873_v36, %v875_v38 }
 0x107   :  { %v668_v40 = vrot.slane %v661_v39, %v995_v37 }
 0x109   :  { %v669_v42 = vcombine.high %v668_v40, %v668_v40  ;;  %v676_v43 = vrot.slane %v668_v40, %v995_v37 }
 0x10a   :  { %v300_v44 = vpop.f32.mrf.mxu1 }
 0x10b   :  { %v683_v45 = vrot.slane %v669_v42, %v995_v37  ;;  %854 = vst.msk [vmem:[%s1097_s4 + $0x3] ss:$8 sm:$0x3] %vm998_vm2, %v676_v43  ;;  %876 = vtanh.f32 %v300_v44 }
 0x10c   :  { %v302_v46 = vpop.f32.mrf.mxu1 }
 0x10d   :  { %855 = vst.msk [vmem:[%s1097_s4 + $0x13] ss:$8 sm:$0x3] %vm998_vm2, %v683_v45  ;;  %878 = vtanh.f32 %v302_v46 }
 0x10e   :  { %880 = vtanh.f32 %v371_v47 }
 0x10f   :  { %882 = vtanh.f32 %v373_v48 }
 0x118   :  { %v877_v49 = vpop.eup %876 }
 0x11a   :  { %v879_v23 = vpop.eup %878 }
 0x11b   :  { %v700_v50 = vcombine.low %v877_v49, %v879_v23  ;;  %v881_v51 = vpop.eup %880 }
 0x11c   :  { %v883_v53 = vpop.eup %882 }
 0x11d   :  { %v707_v52 = vrot.slane %v700_v50, %v995_v37  ;;  %v735_v56 = vcombine.low %v881_v51, %v883_v53 }
 0x11f   :  { %v708_v54 = vcombine.high %v707_v52, %v707_v52  ;;  %v715_v55 = vrot.slane %v707_v52, %v995_v37  ;;  %v742_v59 = vrot.slane %v735_v56, %v995_v37 }
 0x120   :  { %v442_v57 = vpop.f32.mrf.mxu1 }
 0x121   :  { %v722_v58 = vrot.slane %v708_v54, %v995_v37  ;;  %856 = vst.msk [vmem:[%s1097_s4 + $0x4] ss:$8 sm:$0x3] %vm998_vm2, %v715_v55  ;;  %vm447_vm3 = vcmp.gt.f32.partialorder %v442_v57, 0.0  ;;  %v743_v62 = vcombine.high %v742_v59, %v742_v59  ;;  %v750_v63 = vrot.slane %v742_v59, %v995_v37 }
 0x122   :  { %v444_v60 = vpop.f32.mrf.mxu1  ;;  %v850_v61 = vsel %vm447_vm3, 1.0, %v934_v0 }
 0x123   :  { %857 = vst.msk [vmem:[%s1097_s4 + $0x14] ss:$8 sm:$0x3] %vm998_vm2, %v722_v58  ;;  %vm448_vm4 = vcmp.gt.f32.partialorder %v444_v60, 0.0  ;;  %v757_v4 = vrot.slane %v743_v62, %v995_v37  ;;  %v453_v5 = vsub.f32 1.0, %v850_v61 }
 0x124   :  { %v851_v1 = vsel %vm448_vm4, 1.0, %v934_v0  ;;  %858 = vst.msk [vmem:[%s1097_s4 + $0x5] ss:$8 sm:$0x3] %vm998_vm2, %v750_v63 }
 0x125   :  { %v454_v2 = vsub.f32 1.0, %v851_v1  ;;  %v768_v3 = vcombine.low %v850_v61, %v851_v1  ;;  %859 = vst.msk [vmem:[%s1097_s4 + $0x15] ss:$8 sm:$0x3] %vm998_vm2, %v757_v4 }
 0x127   :  { %v775_v6 = vrot.slane %v768_v3, %v995_v37  ;;  %583 = vmatprep.mubr.f32.mxu0 %v454_v2 }
 0x128   :  { %584 = vmatmul.mubr.f32.vlgmr.msra.gmra.mxu0 %v453_v5 }
 0x129   :  { %v776_v7 = vcombine.high %v775_v6, %v775_v6  ;;  %v783_v8 = vrot.slane %v775_v6, %v995_v37 }
 0x12b   :  { %v790_v9 = vrot.slane %v776_v7, %v995_v37  ;;  %860 = vst.msk [vmem:[%s1097_s4 + $0x6] ss:$8 sm:$0x3] %vm998_vm2, %v783_v8 }
 0x12d   :  { %861 = vst.msk [vmem:[%s1097_s4 + $0x16] ss:$8 sm:$0x3] %vm998_vm2, %v790_v9 }
 0x1e8   :  { %v585_v10 = vpop.f32.mrf.mxu0 }
 0x1e9   :  { %vm590_vm5 = vcmp.lt.f32.partialorder %v585_v10, 0.5 }
 0x1ea   :  { %v852_v11 = vsel %vm590_vm5, 1.0, %v934_v0  ;;  %v587_v12 = vpop.f32.mrf.mxu0 }
 0x1eb   :  { %vm591_vm6 = vcmp.lt.f32.partialorder %v587_v12, 0.5  ;;  %v598_v14 = vsub.f32 1.0, %v852_v11 }
 0x1ec   :  { %v853_v13 = vsel %vm591_vm6, 1.0, %v934_v0 }
 0x1ed   :  { %v599_v15 = vsub.f32 1.0, %v853_v13  ;;  %v801_v16 = vcombine.low %v852_v11, %v853_v13 }
 0x1ef   :  { %v602_v17 = vcombine.low %v598_v14, %v599_v15  ;;  %v808_v18 = vrot.slane %v801_v16, %v995_v37 }
 0x1f1   :  { %v609_v20 = vrot.slane %v602_v17, %v995_v37  ;;  %v809_v22 = vcombine.high %v808_v18, %v808_v18  ;;  %v816_v24 = vrot.slane %v808_v18, %v995_v37 }
 0x1f3   :  { %v610_v25 = vcombine.high %v609_v20, %v609_v20  ;;  %v617_v26 = vrot.slane %v609_v20, %v995_v37  ;;  %v823_v0 = vrot.slane %v809_v22, %v995_v37  ;;  %862 = vst.msk [vmem:[%s1097_s4 + $0x7] ss:$8 sm:$0x3] %vm998_vm2, %v816_v24 }
 0x1f5   :  { %v624_v27 = vrot.slane %v610_v25, %v995_v37  ;;  %v628_v28 = vrot.slane %v617_v26, %v627_v19  ;;  %v632_v29 = vrot.slane %v617_v26, %v631_v21  ;;  %863 = vst.msk [vmem:[%s1097_s4 + $0x17] ss:$8 sm:$0x3] %vm998_vm2, %v823_v0 }
 0x1f7   :  { %v636_v31 = vrot.slane %v624_v27, %v627_v19  ;;  %v640_v32 = vrot.slane %v624_v27, %v631_v21  ;;  %v641_v33 = vcombine.low %v628_v28, %v632_v29 }
 0x1f9   :  { %v642_v35 = vcombine.low %v636_v31, %v640_v32  ;;  %v645_v36 = vmul.f32 %v641_v33, %v596_v30 }
 0x1fb   :  { %v646_v37 = vmul.f32 %v642_v35, %v597_v34  ;;  %v649_v38 = vcombine.high %v645_v36, %v645_v36  ;;  %653 = vst [vmem:[%s1097_s4] sm:$0x7] %v645_v36 }
 0x1fd   :  { %v650_v39 = vcombine.high %v646_v37, %v646_v37  ;;  %654 = vst [vmem:[%s1097_s4 + $0x8] sm:$0x7] %v649_v38  ;;  %655 = vst [vmem:[%s1097_s4 + $0x10] sm:$0x7] %v646_v37 }
 0x1ff   :  { %656 = vst [vmem:[%s1097_s4 + $0x18] sm:$0x7] %v650_v39 }
 0x200   :  { %836 = vsyncpa [#allocation3], 1 }
 0x201   :  { %837 = vsyncpa [#allocation5], 1 }

</bundles_post_ra>
